<compile_context>
chip_gen: v5e
topology: v5e:2x2
jax: 0.10.0
libtpu: 0.0.40
codegen_flags: <defaults>
</compile_context>

<pallas_src>
import functools

import jax
import jax.numpy as jnp
import numpy as np
from jax.experimental import pallas as pl
from jax.experimental.pallas import tpu as pltpu

BN_EPS = 1e-5
NEG_BIG = -1e30  # mask value for padded log-softmax columns


# ----------------------- Fused kernel: LSTM + head ---------------------------
def lstm_fused_kernel(x_ref, wx_ref, b_ref, u_ref, wf_ref, o_ref,
                      xw_ref, h_ref, *, T, Bp, H, OUT):
    """x_ref: (T*Bp, D); wx_ref: (D, 4H); b_ref: (1, 4H); u_ref: (H, 4H);
    wf_ref: (H, OUTP) zero-padded to a 128 multiple; o_ref: (T*Bp, OUTP);
    xw_ref scratch: (T*Bp, 4H); h_ref scratch: (T*Bp, H)."""

    # ---- 1) Batched input projection for all timesteps (single MXU matmul,
    #         T*Bp rows). Removes half the matmul work + the bias broadcast
    #         from the serial critical path. Flat layout -> no reshape.
    xw_ref[...] = (
        jnp.dot(x_ref[...], wx_ref[...], preferred_element_type=jnp.float32)
        + b_ref[...]
    )

    u = u_ref[...]                            # (H, 4H), loaded once

    # ---- 2) Sequential recurrence: only h_{t-1} @ U + elementwise per step.
    def step(t, carry):
        ht, ct = carry
        row = pl.multiple_of(t * Bp, 8)       # aligned sublane slice
        gates = xw_ref[pl.ds(row, Bp), :] + jnp.dot(
            ht, u, preferred_element_type=jnp.float32)   # (Bp, 4H)
        # Full-vreg-width activations (4H == 128 lanes), then slice:
        # 1 sigmoid + 1 tanh over the whole tile instead of 3+1 sub-vreg ops.
        sig = jax.nn.sigmoid(gates)
        tnh = jnp.tanh(gates)
        f_t = sig[:, 0 * H:1 * H]
        i_t = sig[:, 1 * H:2 * H]
        o_t = sig[:, 2 * H:3 * H]
        c_c = tnh[:, 3 * H:4 * H]
        # test_flag=True and lstm_drop=0.0  ->  drop_mask == 1.0
        ct = i_t * c_c + f_t * ct
        ht = o_t * jnp.tanh(ct)
        h_ref[pl.ds(row, Bp), :] = ht
        return ht, ct

    zeros = jnp.zeros((Bp, H), jnp.float32)
    jax.lax.fori_loop(0, T, step, (zeros, zeros), unroll=min(T, 8))

    # ---- 3) Fused head: final_linear -> eval-BN scale -> LogSoftmax,
    #         computed lane-dense over OUTP (>=128) columns.
    h_all = h_ref[...]                                       # (T*Bp, H)
    y = jnp.dot(h_all, wf_ref[...], preferred_element_type=jnp.float32)
    # eval-mode BatchNorm1d with running mean 0 / var 1, weight 1, bias 0
    y = y * (1.0 / np.sqrt(1.0 + BN_EPS))
    # Mask padded columns so they do not perturb max / sum-exp.
    col = jax.lax.broadcasted_iota(jnp.int32, y.shape, 1)
    y = jnp.where(col < OUT, y, NEG_BIG)
    m = jnp.max(y, axis=1, keepdims=True)
    z = y - m
    lse = jnp.log(jnp.sum(jnp.exp(z), axis=1, keepdims=True))
    o_ref[...] = (z - lse).astype(o_ref.dtype)               # full-width vst


# ------------------------------- Wrapper --------------------------------------
def lstm_forward(x, params):
    """x: (T, B, D) -> (T*B, OUT) log-probs."""
    T, B, D = x.shape
    H = params["u"].shape[0]
    OUT = params["wf"].shape[1]

    # Pad batch up to a multiple of 8 sublanes (f32 tile height).
    Bp = ((B + 7) // 8) * 8
    # Pad output columns up to a multiple of 128 lanes (lane-dense writeback).
    OUTP = ((OUT + 127) // 128) * 128

    if Bp != B:
        x = jnp.pad(x, ((0, 0), (0, Bp - B), (0, 0)))
    x_flat = x.reshape(T * Bp, D)

    wf_p = params["wf"]
    if OUTP != OUT:
        wf_p = jnp.pad(wf_p, ((0, 0), (0, OUTP - OUT)))

    kernel = functools.partial(lstm_fused_kernel, T=T, Bp=Bp, H=H, OUT=OUT)

    out_p = pl.pallas_call(
        kernel,
        out_shape=jax.ShapeDtypeStruct((T * Bp, OUTP), jnp.float32),
        scratch_shapes=[
            pltpu.VMEM((T * Bp, 4 * H), jnp.float32),  # hoisted x-projection
            pltpu.VMEM((T * Bp, H), jnp.float32),      # all hidden states
        ],
    )(x_flat, params["wx"], params["b"], params["u"], wf_p)

    out = out_p.reshape(T, Bp, OUTP)[:, :B, :OUT].reshape(T * B, OUT)
    return out


# ------------------------------- Pure-JAX reference --------------------------
def lstm_forward_ref(x, params):
    T, B, D = x.shape
    wx, b, u, wf = params["wx"], params["b"], params["u"], params["wf"]
    H = u.shape[0]

    def step(carry, xt):
        ht, ct = carry
        gates = xt @ wx + b + ht @ u
        f = jax.nn.sigmoid(gates[:, 0 * H:1 * H])
        i = jax.nn.sigmoid(gates[:, 1 * H:2 * H])
        o = jax.nn.sigmoid(gates[:, 2 * H:3 * H])
        cc = jnp.tanh(gates[:, 3 * H:4 * H])
        ct = i * cc + f * ct
        ht = o * jnp.tanh(ct)
        return (ht, ct), ht

    init = (jnp.zeros((B, H), jnp.float32), jnp.zeros((B, H), jnp.float32))
    _, h = jax.lax.scan(step, init, x)
    y = h.reshape(T * B, H) @ wf
    y = y / jnp.sqrt(1.0 + BN_EPS)
    return jax.nn.log_softmax(y, axis=1)


# ------------------------------------ Main ------------------------------------
if __name__ == "__main__":
    T, B, D, H, OUT = 8, 4, 16, 32, 16

    key = jax.random.PRNGKey(0)
    kx, kwx, kb, ku, kwf = jax.random.split(key, 5)

    # Deterministic synthetic parameters (shapes match the module's Linears:
    # wfx/wix/wox/wcx: (H, D) with bias; ufh/uih/uoh/uch: (H, H) no bias;
    # final_linear: (OUT, H) no bias). Stored pre-transposed for x @ W form.
    x = jax.random.normal(kx, (T, B, D), dtype=jnp.float32)
    params = {
        "wx": 0.2 * jax.random.normal(kwx, (D, 4 * H), dtype=jnp.float32),
        "b": 0.1 * jax.random.normal(kb, (1, 4 * H), dtype=jnp.float32),
        "u": 0.2 * jax.random.normal(ku, (H, 4 * H), dtype=jnp.float32),
        "wf": float(np.sqrt(0.01 / (H + OUT)))
              * jax.random.uniform(kwf, (H, OUT), dtype=jnp.float32,
                                   minval=-1.0, maxval=1.0),
    }

    # TODO(synk): train-mode Bernoulli dropout, bidirectional path and the
    # to_do=='forward' op-counting bookkeeping are not implemented (eval path).

    out = jax.block_until_ready(lstm_forward(x, params))
    ref = jax.block_until_ready(lstm_forward_ref(x, params))

    assert out.shape == (T * B, OUT)
    np.testing.assert_allclose(np.asarray(out), np.asarray(ref),
                               rtol=1e-4, atol=1e-4)
    print("KERNEL_OK")
</pallas_src>

<mosaic_0001>
module attributes {stable_mosaic.version = 11 : i64} {
  func.func @lstm_fused_kernel(%arg0: memref<64x16xf32, #tpu.memory_space<vmem>>, %arg1: memref<16x128xf32, #tpu.memory_space<vmem>>, %arg2: memref<1x128xf32, #tpu.memory_space<vmem>>, %arg3: memref<32x128xf32, #tpu.memory_space<vmem>>, %arg4: memref<32x128xf32, #tpu.memory_space<vmem>>, %arg5: memref<64x128xf32, #tpu.memory_space<vmem>>, %arg6: memref<64x128xf32, #tpu.memory_space<vmem>>, %arg7: memref<64x32xf32, #tpu.memory_space<vmem>>) attributes {dimension_semantics = [], scalar_prefetch = 0 : i64, scratch_operands = 2 : i64, tpu.core_type = #tpu.core_type<tc>} {
    %c0 = arith.constant 0 : index
    %c0_0 = arith.constant 0 : index
    %0 = vector.load %arg0[%c0, %c0_0] : memref<64x16xf32, #tpu.memory_space<vmem>>, vector<64x16xf32>
    %c0_1 = arith.constant 0 : index
    %c0_2 = arith.constant 0 : index
    %1 = vector.load %arg1[%c0_1, %c0_2] : memref<16x128xf32, #tpu.memory_space<vmem>>, vector<16x128xf32>
    %cst = arith.constant dense<0.000000e+00> : vector<64x128xf32>
    %2 = tpu.matmul %0, %1, %cst {dimension_numbers = #tpu.dot_dimension_numbers<[1], [0], [0], [1], [0, 0, 1, 1], [], []>} : vector<64x16xf32>, vector<16x128xf32>, vector<64x128xf32> -> vector<64x128xf32>
    %c0_3 = arith.constant 0 : index
    %c0_4 = arith.constant 0 : index
    %3 = vector.load %arg2[%c0_3, %c0_4] : memref<1x128xf32, #tpu.memory_space<vmem>>, vector<1x128xf32>
    %4 = vector.broadcast %3 : vector<1x128xf32> to vector<64x128xf32>
    %5 = arith.addf %2, %4 : vector<64x128xf32>
    %c0_5 = arith.constant 0 : index
    %c0_6 = arith.constant 0 : index
    %6 = vector.load %arg6[%c0_5, %c0_6] : memref<64x128xf32, #tpu.memory_space<vmem>>, vector<64x128xf32>
    tpu.vector_store %arg6[%c0_5, %c0_6], %5 {strides = array<i32>} : memref<64x128xf32, #tpu.memory_space<vmem>>, vector<64x128xf32>,
    %c0_7 = arith.constant 0 : index
    %c0_8 = arith.constant 0 : index
    %7 = vector.load %arg3[%c0_7, %c0_8] : memref<32x128xf32, #tpu.memory_space<vmem>>, vector<32x128xf32>
    %cst_9 = arith.constant 0.000000e+00 : f32
    %8 = vector.broadcast %cst_9 : f32 to vector<8x32xf32>
    %c0_i32 = arith.constant 0 : i32
    %c8_i32 = arith.constant 8 : i32
    %9 = arith.muli %c0_i32, %c8_i32 : i32
    %10 = tpu.assume_multiple %9, 8 : i32
    %11 = arith.index_cast %10 : i32 to index
    %c0_10 = arith.constant 0 : index
    %12 = vector.load %arg6[%11, %c0_10] : memref<64x128xf32, #tpu.memory_space<vmem>>, vector<8x128xf32>
    %cst_11 = arith.constant dense<0.000000e+00> : vector<8x128xf32>
    %13 = tpu.matmul %8, %7, %cst_11 {dimension_numbers = #tpu.dot_dimension_numbers<[1], [0], [0], [1], [0, 0, 1, 1], [], []>} : vector<8x32xf32>, vector<32x128xf32>, vector<8x128xf32> -> vector<8x128xf32>
    %14 = arith.addf %12, %13 : vector<8x128xf32>
    %15 = arith.negf %14 : vector<8x128xf32>
    %16 = math.exp %15 : vector<8x128xf32>
    %cst_12 = arith.constant 1.000000e+00 : f32
    %17 = vector.broadcast %cst_12 : f32 to vector<8x128xf32>
    %18 = arith.addf %17, %16 : vector<8x128xf32>
    %19 = arith.divf %17, %18 : vector<8x128xf32>
    %20 = math.tanh %14 : vector<8x128xf32>
    %21 = vector.extract_strided_slice %19 {offsets = [0, 0], sizes = [8, 32], strides = [1, 1]} : vector<8x128xf32> to vector<8x32xf32>
    %22 = vector.extract_strided_slice %19 {offsets = [0, 32], sizes = [8, 32], strides = [1, 1]} : vector<8x128xf32> to vector<8x32xf32>
    %23 = vector.extract_strided_slice %19 {offsets = [0, 64], sizes = [8, 32], strides = [1, 1]} : vector<8x128xf32> to vector<8x32xf32>
    %24 = vector.extract_strided_slice %20 {offsets = [0, 96], sizes = [8, 32], strides = [1, 1]} : vector<8x128xf32> to vector<8x32xf32>
    %25 = arith.mulf %22, %24 : vector<8x32xf32>
    %26 = arith.mulf %21, %8 : vector<8x32xf32>
    %27 = arith.addf %25, %26 : vector<8x32xf32>
    %28 = math.tanh %27 : vector<8x32xf32>
    %29 = arith.mulf %23, %28 : vector<8x32xf32>
    %30 = arith.index_cast %10 : i32 to index
    %c0_13 = arith.constant 0 : index
    %31 = vector.load %arg7[%30, %c0_13] : memref<64x32xf32, #tpu.memory_space<vmem>>, vector<8x32xf32>
    tpu.vector_store %arg7[%30, %c0_13], %29 {strides = array<i32>} : memref<64x32xf32, #tpu.memory_space<vmem>>, vector<8x32xf32>,
    %c1_i32 = arith.constant 1 : i32
    %c8_i32_14 = arith.constant 8 : i32
    %32 = arith.muli %c1_i32, %c8_i32_14 : i32
    %33 = tpu.assume_multiple %32, 8 : i32
    %34 = arith.index_cast %33 : i32 to index
    %c0_15 = arith.constant 0 : index
    %35 = vector.load %arg6[%34, %c0_15] : memref<64x128xf32, #tpu.memory_space<vmem>>, vector<8x128xf32>
    %cst_16 = arith.constant dense<0.000000e+00> : vector<8x128xf32>
    %36 = tpu.matmul %29, %7, %cst_16 {dimension_numbers = #tpu.dot_dimension_numbers<[1], [0], [0], [1], [0, 0, 1, 1], [], []>} : vector<8x32xf32>, vector<32x128xf32>, vector<8x128xf32> -> vector<8x128xf32>
    %37 = arith.addf %35, %36 : vector<8x128xf32>
    %38 = arith.negf %37 : vector<8x128xf32>
    %39 = math.exp %38 : vector<8x128xf32>
    %cst_17 = arith.constant 1.000000e+00 : f32
    %40 = vector.broadcast %cst_17 : f32 to vector<8x128xf32>
    %41 = arith.addf %40, %39 : vector<8x128xf32>
    %42 = arith.divf %40, %41 : vector<8x128xf32>
    %43 = math.tanh %37 : vector<8x128xf32>
    %44 = vector.extract_strided_slice %42 {offsets = [0, 0], sizes = [8, 32], strides = [1, 1]} : vector<8x128xf32> to vector<8x32xf32>
    %45 = vector.extract_strided_slice %42 {offsets = [0, 32], sizes = [8, 32], strides = [1, 1]} : vector<8x128xf32> to vector<8x32xf32>
    %46 = vector.extract_strided_slice %42 {offsets = [0, 64], sizes = [8, 32], strides = [1, 1]} : vector<8x128xf32> to vector<8x32xf32>
    %47 = vector.extract_strided_slice %43 {offsets = [0, 96], sizes = [8, 32], strides = [1, 1]} : vector<8x128xf32> to vector<8x32xf32>
    %48 = arith.mulf %45, %47 : vector<8x32xf32>
    %49 = arith.mulf %44, %27 : vector<8x32xf32>
    %50 = arith.addf %48, %49 : vector<8x32xf32>
    %51 = math.tanh %50 : vector<8x32xf32>
    %52 = arith.mulf %46, %51 : vector<8x32xf32>
    %53 = arith.index_cast %33 : i32 to index
    %c0_18 = arith.constant 0 : index
    %54 = vector.load %arg7[%53, %c0_18] : memref<64x32xf32, #tpu.memory_space<vmem>>, vector<8x32xf32>
    tpu.vector_store %arg7[%53, %c0_18], %52 {strides = array<i32>} : memref<64x32xf32, #tpu.memory_space<vmem>>, vector<8x32xf32>,
    %c2_i32 = arith.constant 2 : i32
    %c8_i32_19 = arith.constant 8 : i32
    %55 = arith.muli %c2_i32, %c8_i32_19 : i32
    %56 = tpu.assume_multiple %55, 8 : i32
    %57 = arith.index_cast %56 : i32 to index
    %c0_20 = arith.constant 0 : index
    %58 = vector.load %arg6[%57, %c0_20] : memref<64x128xf32, #tpu.memory_space<vmem>>, vector<8x128xf32>
    %cst_21 = arith.constant dense<0.000000e+00> : vector<8x128xf32>
    %59 = tpu.matmul %52, %7, %cst_21 {dimension_numbers = #tpu.dot_dimension_numbers<[1], [0], [0], [1], [0, 0, 1, 1], [], []>} : vector<8x32xf32>, vector<32x128xf32>, vector<8x128xf32> -> vector<8x128xf32>
    %60 = arith.addf %58, %59 : vector<8x128xf32>
    %61 = arith.negf %60 : vector<8x128xf32>
    %62 = math.exp %61 : vector<8x128xf32>
    %cst_22 = arith.constant 1.000000e+00 : f32
    %63 = vector.broadcast %cst_22 : f32 to vector<8x128xf32>
    %64 = arith.addf %63, %62 : vector<8x128xf32>
    %65 = arith.divf %63, %64 : vector<8x128xf32>
    %66 = math.tanh %60 : vector<8x128xf32>
    %67 = vector.extract_strided_slice %65 {offsets = [0, 0], sizes = [8, 32], strides = [1, 1]} : vector<8x128xf32> to vector<8x32xf32>
    %68 = vector.extract_strided_slice %65 {offsets = [0, 32], sizes = [8, 32], strides = [1, 1]} : vector<8x128xf32> to vector<8x32xf32>
    %69 = vector.extract_strided_slice %65 {offsets = [0, 64], sizes = [8, 32], strides = [1, 1]} : vector<8x128xf32> to vector<8x32xf32>
    %70 = vector.extract_strided_slice %66 {offsets = [0, 96], sizes = [8, 32], strides = [1, 1]} : vector<8x128xf32> to vector<8x32xf32>
    %71 = arith.mulf %68, %70 : vector<8x32xf32>
    %72 = arith.mulf %67, %50 : vector<8x32xf32>
    %73 = arith.addf %71, %72 : vector<8x32xf32>
    %74 = math.tanh %73 : vector<8x32xf32>
    %75 = arith.mulf %69, %74 : vector<8x32xf32>
    %76 = arith.index_cast %56 : i32 to index
    %c0_23 = arith.constant 0 : index
    %77 = vector.load %arg7[%76, %c0_23] : memref<64x32xf32, #tpu.memory_space<vmem>>, vector<8x32xf32>
    tpu.vector_store %arg7[%76, %c0_23], %75 {strides = array<i32>} : memref<64x32xf32, #tpu.memory_space<vmem>>, vector<8x32xf32>,
    %c3_i32 = arith.constant 3 : i32
    %c8_i32_24 = arith.constant 8 : i32
    %78 = arith.muli %c3_i32, %c8_i32_24 : i32
    %79 = tpu.assume_multiple %78, 8 : i32
    %80 = arith.index_cast %79 : i32 to index
    %c0_25 = arith.constant 0 : index
    %81 = vector.load %arg6[%80, %c0_25] : memref<64x128xf32, #tpu.memory_space<vmem>>, vector<8x128xf32>
    %cst_26 = arith.constant dense<0.000000e+00> : vector<8x128xf32>
    %82 = tpu.matmul %75, %7, %cst_26 {dimension_numbers = #tpu.dot_dimension_numbers<[1], [0], [0], [1], [0, 0, 1, 1], [], []>} : vector<8x32xf32>, vector<32x128xf32>, vector<8x128xf32> -> vector<8x128xf32>
    %83 = arith.addf %81, %82 : vector<8x128xf32>
    %84 = arith.negf %83 : vector<8x128xf32>
    %85 = math.exp %84 : vector<8x128xf32>
    %cst_27 = arith.constant 1.000000e+00 : f32
    %86 = vector.broadcast %cst_27 : f32 to vector<8x128xf32>
    %87 = arith.addf %86, %85 : vector<8x128xf32>
    %88 = arith.divf %86, %87 : vector<8x128xf32>
    %89 = math.tanh %83 : vector<8x128xf32>
    %90 = vector.extract_strided_slice %88 {offsets = [0, 0], sizes = [8, 32], strides = [1, 1]} : vector<8x128xf32> to vector<8x32xf32>
    %91 = vector.extract_strided_slice %88 {offsets = [0, 32], sizes = [8, 32], strides = [1, 1]} : vector<8x128xf32> to vector<8x32xf32>
    %92 = vector.extract_strided_slice %88 {offsets = [0, 64], sizes = [8, 32], strides = [1, 1]} : vector<8x128xf32> to vector<8x32xf32>
    %93 = vector.extract_strided_slice %89 {offsets = [0, 96], sizes = [8, 32], strides = [1, 1]} : vector<8x128xf32> to vector<8x32xf32>
    %94 = arith.mulf %91, %93 : vector<8x32xf32>
    %95 = arith.mulf %90, %73 : vector<8x32xf32>
    %96 = arith.addf %94, %95 : vector<8x32xf32>
    %97 = math.tanh %96 : vector<8x32xf32>
    %98 = arith.mulf %92, %97 : vector<8x32xf32>
    %99 = arith.index_cast %79 : i32 to index
    %c0_28 = arith.constant 0 : index
    %100 = vector.load %arg7[%99, %c0_28] : memref<64x32xf32, #tpu.memory_space<vmem>>, vector<8x32xf32>
    tpu.vector_store %arg7[%99, %c0_28], %98 {strides = array<i32>} : memref<64x32xf32, #tpu.memory_space<vmem>>, vector<8x32xf32>,
    %c4_i32 = arith.constant 4 : i32
    %c8_i32_29 = arith.constant 8 : i32
    %101 = arith.muli %c4_i32, %c8_i32_29 : i32
    %102 = tpu.assume_multiple %101, 8 : i32
    %103 = arith.index_cast %102 : i32 to index
    %c0_30 = arith.constant 0 : index
    %104 = vector.load %arg6[%103, %c0_30] : memref<64x128xf32, #tpu.memory_space<vmem>>, vector<8x128xf32>
    %cst_31 = arith.constant dense<0.000000e+00> : vector<8x128xf32>
    %105 = tpu.matmul %98, %7, %cst_31 {dimension_numbers = #tpu.dot_dimension_numbers<[1], [0], [0], [1], [0, 0, 1, 1], [], []>} : vector<8x32xf32>, vector<32x128xf32>, vector<8x128xf32> -> vector<8x128xf32>
    %106 = arith.addf %104, %105 : vector<8x128xf32>
    %107 = arith.negf %106 : vector<8x128xf32>
    %108 = math.exp %107 : vector<8x128xf32>
    %cst_32 = arith.constant 1.000000e+00 : f32
    %109 = vector.broadcast %cst_32 : f32 to vector<8x128xf32>
    %110 = arith.addf %109, %108 : vector<8x128xf32>
    %111 = arith.divf %109, %110 : vector<8x128xf32>
    %112 = math.tanh %106 : vector<8x128xf32>
    %113 = vector.extract_strided_slice %111 {offsets = [0, 0], sizes = [8, 32], strides = [1, 1]} : vector<8x128xf32> to vector<8x32xf32>
    %114 = vector.extract_strided_slice %111 {offsets = [0, 32], sizes = [8, 32], strides = [1, 1]} : vector<8x128xf32> to vector<8x32xf32>
    %115 = vector.extract_strided_slice %111 {offsets = [0, 64], sizes = [8, 32], strides = [1, 1]} : vector<8x128xf32> to vector<8x32xf32>
    %116 = vector.extract_strided_slice %112 {offsets = [0, 96], sizes = [8, 32], strides = [1, 1]} : vector<8x128xf32> to vector<8x32xf32>
    %117 = arith.mulf %114, %116 : vector<8x32xf32>
    %118 = arith.mulf %113, %96 : vector<8x32xf32>
    %119 = arith.addf %117, %118 : vector<8x32xf32>
    %120 = math.tanh %119 : vector<8x32xf32>
    %121 = arith.mulf %115, %120 : vector<8x32xf32>
    %122 = arith.index_cast %102 : i32 to index
    %c0_33 = arith.constant 0 : index
    %123 = vector.load %arg7[%122, %c0_33] : memref<64x32xf32, #tpu.memory_space<vmem>>, vector<8x32xf32>
    tpu.vector_store %arg7[%122, %c0_33], %121 {strides = array<i32>} : memref<64x32xf32, #tpu.memory_space<vmem>>, vector<8x32xf32>,
    %c5_i32 = arith.constant 5 : i32
    %c8_i32_34 = arith.constant 8 : i32
    %124 = arith.muli %c5_i32, %c8_i32_34 : i32
    %125 = tpu.assume_multiple %124, 8 : i32
    %126 = arith.index_cast %125 : i32 to index
    %c0_35 = arith.constant 0 : index
    %127 = vector.load %arg6[%126, %c0_35] : memref<64x128xf32, #tpu.memory_space<vmem>>, vector<8x128xf32>
    %cst_36 = arith.constant dense<0.000000e+00> : vector<8x128xf32>
    %128 = tpu.matmul %121, %7, %cst_36 {dimension_numbers = #tpu.dot_dimension_numbers<[1], [0], [0], [1], [0, 0, 1, 1], [], []>} : vector<8x32xf32>, vector<32x128xf32>, vector<8x128xf32> -> vector<8x128xf32>
    %129 = arith.addf %127, %128 : vector<8x128xf32>
    %130 = arith.negf %129 : vector<8x128xf32>
    %131 = math.exp %130 : vector<8x128xf32>
    %cst_37 = arith.constant 1.000000e+00 : f32
    %132 = vector.broadcast %cst_37 : f32 to vector<8x128xf32>
    %133 = arith.addf %132, %131 : vector<8x128xf32>
    %134 = arith.divf %132, %133 : vector<8x128xf32>
    %135 = math.tanh %129 : vector<8x128xf32>
    %136 = vector.extract_strided_slice %134 {offsets = [0, 0], sizes = [8, 32], strides = [1, 1]} : vector<8x128xf32> to vector<8x32xf32>
    %137 = vector.extract_strided_slice %134 {offsets = [0, 32], sizes = [8, 32], strides = [1, 1]} : vector<8x128xf32> to vector<8x32xf32>
    %138 = vector.extract_strided_slice %134 {offsets = [0, 64], sizes = [8, 32], strides = [1, 1]} : vector<8x128xf32> to vector<8x32xf32>
    %139 = vector.extract_strided_slice %135 {offsets = [0, 96], sizes = [8, 32], strides = [1, 1]} : vector<8x128xf32> to vector<8x32xf32>
    %140 = arith.mulf %137, %139 : vector<8x32xf32>
    %141 = arith.mulf %136, %119 : vector<8x32xf32>
    %142 = arith.addf %140, %141 : vector<8x32xf32>
    %143 = math.tanh %142 : vector<8x32xf32>
    %144 = arith.mulf %138, %143 : vector<8x32xf32>
    %145 = arith.index_cast %125 : i32 to index
    %c0_38 = arith.constant 0 : index
    %146 = vector.load %arg7[%145, %c0_38] : memref<64x32xf32, #tpu.memory_space<vmem>>, vector<8x32xf32>
    tpu.vector_store %arg7[%145, %c0_38], %144 {strides = array<i32>} : memref<64x32xf32, #tpu.memory_space<vmem>>, vector<8x32xf32>,
    %c6_i32 = arith.constant 6 : i32
    %c8_i32_39 = arith.constant 8 : i32
    %147 = arith.muli %c6_i32, %c8_i32_39 : i32
    %148 = tpu.assume_multiple %147, 8 : i32
    %149 = arith.index_cast %148 : i32 to index
    %c0_40 = arith.constant 0 : index
    %150 = vector.load %arg6[%149, %c0_40] : memref<64x128xf32, #tpu.memory_space<vmem>>, vector<8x128xf32>
    %cst_41 = arith.constant dense<0.000000e+00> : vector<8x128xf32>
    %151 = tpu.matmul %144, %7, %cst_41 {dimension_numbers = #tpu.dot_dimension_numbers<[1], [0], [0], [1], [0, 0, 1, 1], [], []>} : vector<8x32xf32>, vector<32x128xf32>, vector<8x128xf32> -> vector<8x128xf32>
    %152 = arith.addf %150, %151 : vector<8x128xf32>
    %153 = arith.negf %152 : vector<8x128xf32>
    %154 = math.exp %153 : vector<8x128xf32>
    %cst_42 = arith.constant 1.000000e+00 : f32
    %155 = vector.broadcast %cst_42 : f32 to vector<8x128xf32>
    %156 = arith.addf %155, %154 : vector<8x128xf32>
    %157 = arith.divf %155, %156 : vector<8x128xf32>
    %158 = math.tanh %152 : vector<8x128xf32>
    %159 = vector.extract_strided_slice %157 {offsets = [0, 0], sizes = [8, 32], strides = [1, 1]} : vector<8x128xf32> to vector<8x32xf32>
    %160 = vector.extract_strided_slice %157 {offsets = [0, 32], sizes = [8, 32], strides = [1, 1]} : vector<8x128xf32> to vector<8x32xf32>
    %161 = vector.extract_strided_slice %157 {offsets = [0, 64], sizes = [8, 32], strides = [1, 1]} : vector<8x128xf32> to vector<8x32xf32>
    %162 = vector.extract_strided_slice %158 {offsets = [0, 96], sizes = [8, 32], strides = [1, 1]} : vector<8x128xf32> to vector<8x32xf32>
    %163 = arith.mulf %160, %162 : vector<8x32xf32>
    %164 = arith.mulf %159, %142 : vector<8x32xf32>
    %165 = arith.addf %163, %164 : vector<8x32xf32>
    %166 = math.tanh %165 : vector<8x32xf32>
    %167 = arith.mulf %161, %166 : vector<8x32xf32>
    %168 = arith.index_cast %148 : i32 to index
    %c0_43 = arith.constant 0 : index
    %169 = vector.load %arg7[%168, %c0_43] : memref<64x32xf32, #tpu.memory_space<vmem>>, vector<8x32xf32>
    tpu.vector_store %arg7[%168, %c0_43], %167 {strides = array<i32>} : memref<64x32xf32, #tpu.memory_space<vmem>>, vector<8x32xf32>,
    %c7_i32 = arith.constant 7 : i32
    %c8_i32_44 = arith.constant 8 : i32
    %170 = arith.muli %c7_i32, %c8_i32_44 : i32
    %171 = tpu.assume_multiple %170, 8 : i32
    %172 = arith.index_cast %171 : i32 to index
    %c0_45 = arith.constant 0 : index
    %173 = vector.load %arg6[%172, %c0_45] : memref<64x128xf32, #tpu.memory_space<vmem>>, vector<8x128xf32>
    %cst_46 = arith.constant dense<0.000000e+00> : vector<8x128xf32>
    %174 = tpu.matmul %167, %7, %cst_46 {dimension_numbers = #tpu.dot_dimension_numbers<[1], [0], [0], [1], [0, 0, 1, 1], [], []>} : vector<8x32xf32>, vector<32x128xf32>, vector<8x128xf32> -> vector<8x128xf32>
    %175 = arith.addf %173, %174 : vector<8x128xf32>
    %176 = arith.negf %175 : vector<8x128xf32>
    %177 = math.exp %176 : vector<8x128xf32>
    %cst_47 = arith.constant 1.000000e+00 : f32
    %178 = vector.broadcast %cst_47 : f32 to vector<8x128xf32>
    %179 = arith.addf %178, %177 : vector<8x128xf32>
    %180 = arith.divf %178, %179 : vector<8x128xf32>
    %181 = math.tanh %175 : vector<8x128xf32>
    %182 = vector.extract_strided_slice %180 {offsets = [0, 0], sizes = [8, 32], strides = [1, 1]} : vector<8x128xf32> to vector<8x32xf32>
    %183 = vector.extract_strided_slice %180 {offsets = [0, 32], sizes = [8, 32], strides = [1, 1]} : vector<8x128xf32> to vector<8x32xf32>
    %184 = vector.extract_strided_slice %180 {offsets = [0, 64], sizes = [8, 32], strides = [1, 1]} : vector<8x128xf32> to vector<8x32xf32>
    %185 = vector.extract_strided_slice %181 {offsets = [0, 96], sizes = [8, 32], strides = [1, 1]} : vector<8x128xf32> to vector<8x32xf32>
    %186 = arith.mulf %183, %185 : vector<8x32xf32>
    %187 = arith.mulf %182, %165 : vector<8x32xf32>
    %188 = arith.addf %186, %187 : vector<8x32xf32>
    %189 = math.tanh %188 : vector<8x32xf32>
    %190 = arith.mulf %184, %189 : vector<8x32xf32>
    %191 = arith.index_cast %171 : i32 to index
    %c0_48 = arith.constant 0 : index
    %192 = vector.load %arg7[%191, %c0_48] : memref<64x32xf32, #tpu.memory_space<vmem>>, vector<8x32xf32>
    tpu.vector_store %arg7[%191, %c0_48], %190 {strides = array<i32>} : memref<64x32xf32, #tpu.memory_space<vmem>>, vector<8x32xf32>,
    %c8_i32_49 = arith.constant 8 : i32
    %c0_50 = arith.constant 0 : index
    %c0_51 = arith.constant 0 : index
    %193 = vector.load %arg7[%c0_50, %c0_51] : memref<64x32xf32, #tpu.memory_space<vmem>>, vector<64x32xf32>
    %c0_52 = arith.constant 0 : index
    %c0_53 = arith.constant 0 : index
    %194 = vector.load %arg4[%c0_52, %c0_53] : memref<32x128xf32, #tpu.memory_space<vmem>>, vector<32x128xf32>
    %cst_54 = arith.constant dense<0.000000e+00> : vector<64x128xf32>
    %195 = tpu.matmul %193, %194, %cst_54 {dimension_numbers = #tpu.dot_dimension_numbers<[1], [0], [0], [1], [0, 0, 1, 1], [], []>} : vector<64x32xf32>, vector<32x128xf32>, vector<64x128xf32> -> vector<64x128xf32>
    %cst_55 = arith.constant 0.999994993 : f32
    %196 = vector.broadcast %cst_55 : f32 to vector<64x128xf32>
    %197 = arith.mulf %195, %196 : vector<64x128xf32>
    %198 = tpu.iota {dimensions = array<i32: 1>} : vector<64x128xi32>
    %c16_i32 = arith.constant 16 : i32
    %199 = vector.broadcast %c16_i32 : i32 to vector<64x128xi32>
    %200 = arith.cmpi slt, %198, %199 : vector<64x128xi32>
    %cst_56 = arith.constant -1.000000e+30 : f32
    %201 = vector.broadcast %cst_56 : f32 to vector<64x128xf32>
    %202 = arith.select %200, %197, %201 : vector<64x128xi1>, vector<64x128xf32>
    %cst_57 = arith.constant dense<0xFF800000> : vector<64xf32>
    %203 = vector.multi_reduction <maximumf>, %202, %cst_57 [1] : vector<64x128xf32> to vector<64xf32>
    %204 = vector.shape_cast %203 : vector<64xf32> to vector<64x1xf32>
    %205 = vector.broadcast %204 : vector<64x1xf32> to vector<64x128xf32>
    %206 = arith.subf %202, %205 : vector<64x128xf32>
    %207 = math.exp %206 : vector<64x128xf32>
    %cst_58 = arith.constant dense<0.000000e+00> : vector<64xf32>
    %208 = vector.multi_reduction <add>, %207, %cst_58 [1] : vector<64x128xf32> to vector<64xf32>
    %209 = vector.shape_cast %208 : vector<64xf32> to vector<64x1xf32>
    %210 = math.log %209 : vector<64x1xf32>
    %211 = vector.broadcast %210 : vector<64x1xf32> to vector<64x128xf32>
    %212 = arith.subf %206, %211 : vector<64x128xf32>
    %c0_59 = arith.constant 0 : index
    %c0_60 = arith.constant 0 : index
    %213 = vector.load %arg5[%c0_59, %c0_60] : memref<64x128xf32, #tpu.memory_space<vmem>>, vector<64x128xf32>
    tpu.vector_store %arg5[%c0_59, %c0_60], %212 {strides = array<i32>} : memref<64x128xf32, #tpu.memory_space<vmem>>, vector<64x128xf32>,
    return
  }
}

</mosaic_0001>

<bundles_post_ra>
// kernel: tpu_custom_call.1
= control target key start
LH: loop header
LB: loop body
LE: loop exit
PB: predicated region body
PF: predicated region fallthrough
CT: control target
= control target key end

     0   :  { %vm35_vm0 = vcmask 130048   ;;  %s1297_s0 = inlined_call_operand.vmem [shape: f32[64,16], index: 0, kind: input, shape index: {}]   ;;  %s1298_s1 = inlined_call_operand.vmem [shape: f32[16,128], index: 1, kind: input, shape index: {}]   ;;  %s1299_s2 = inlined_call_operand.vmem [shape: f32[1,128], index: 2, kind: input, shape index: {}]   ;;  %s1300_s3 = inlined_call_operand.vmem [shape: f32[32,128], index: 3, kind: input, shape index: {}]   ;;  %s1301_s4 = inlined_call_operand.vmem [shape: f32[32,128], index: 4, kind: input, shape index: {}]   ;;  %s1302_s5 = inlined_call_operand.hbm [shape: f32[64,128], index: 5, kind: output, shape index: {}]  }
   0x1   :  { %v30_v0 = vld [vmem:[%s1298_s1 + $0x8] sm:$0xff]  ;;  %v29_v1 = vld [vmem:[%s1298_s1] sm:$0xff]  ;;  %v28_v2 = vld [vmem:[%s1297_s0 + $0x38] sm:$0xff] }
   0x2   :  { %918 = vmatpush.msra.mxu2 %v30_v0  ;;  %v1103_v3 = vld [vmem:[%s1300_s3 + $0x18] sm:$0xff]  ;;  %74 = vmatpush.msra.mxu0 %v30_v0  ;;  %v21_v4 = vld [vmem:[%s1297_s0] sm:$0xff] }
   0x3   :  { %269 = vmatpush.msra.mxu3 %v1103_v3  ;;  %341 = vmatpush.msra.mxu1 %v1103_v3 }
   0x4   :  { %919 = vmatpush.msra.mxu2 %v29_v1  ;;  %75 = vmatpush.msra.mxu0 %v29_v1 }
   0x5   :  { %10 = vsyncpa [#allocation5], 0  ;;  %894 = vmatmul.msk.f32.vlgmr.msra.gmra.mxu2 %vm35_vm0, %v28_v2  ;;  %v1114_v5 = vld [vmem:[%s1300_s3 + $0x10] sm:$0xff]  ;;  %887 = vmatmul.msk.f32.vlgmr.msra.gmra.mxu0 %vm35_vm0, %v21_v4  ;;  %v1122_v6 = vld [vmem:[%s1300_s3 + $0x8] sm:$0xff]  ;;  %v1054_v8 = vmov 0.0   ;;  %s1055_s9 = smov 64  }
   0x6   :  { %130 = vmatpush.msrb.mxu2 %v1103_v3  ;;  %270 = vmatpush.msra.mxu3 %v1114_v5  ;;  %v1130_v7 = vld [vmem:[%s1300_s3] sm:$0xff]  ;;  %s1057_s10 = smov 96   ;;  %v22_v37 = vld [vmem:[%s1297_s0 + $0x8] sm:$0xff]  ;;  %vm114_vm5 = vcmask 261120   ;;  %v23_v2 = vld [vmem:[%s1297_s0 + $0x10] sm:$0xff]  ;;  %s875_s7 = sshll.u32 %s1302_s5, 4  ;;  %s876_s7 = int_to_ptr.hbm [resolvable:$true] %s875_s7 }
   0x7   :  { %342 = vmatpush.msra.mxu1 %v1114_v5  ;;  %v1158_v11 = vld [vmem:[%s1299_s2] ss:$0 sm:$0xff]  ;;  %s1056_s2 = smov 32   ;;  %s1059_s3 = smov 128  }
   0x8   :  { %131 = vmatpush.msrb.mxu2 %v1114_v5  ;;  %271 = vmatpush.msra.mxu3 %v1122_v6  ;;  %s1060_s8 = smov 8  }
   0x9   :  { %343 = vmatpush.msra.mxu1 %v1122_v6 }
   0xa   :  { %132 = vmatpush.msrb.mxu2 %v1122_v6  ;;  %272 = vmatpush.msra.mxu3 %v1130_v7 }
   0xb   :  { %344 = vmatpush.msra.mxu1 %v1130_v7 }
   0xc   :  { %485 = vmatpush.msrb.mxu3 %v1103_v3  ;;  %133 = vmatpush.msrb.mxu2 %v1130_v7 }
   0xd   :  { %557 = vmatpush.msrb.mxu1 %v1103_v3  ;;  %134 = vmatmul.f32.vlgmr.msrb.gmra.mxu2 %v1054_v8 }
   0xe   :  { %486 = vmatpush.msrb.mxu3 %v1114_v5  ;;  %197 = vmatpush.msra.mxu2 %v1103_v3 }
   0xf   :  { %558 = vmatpush.msrb.mxu1 %v1114_v5  ;;  %888 = vmatmul.msk.f32.gmra.mxu0 %vm35_vm0, %v22_v37 }
  0x10   :  { %487 = vmatpush.msrb.mxu3 %v1122_v6  ;;  %198 = vmatpush.msra.mxu2 %v1114_v5 }
  0x11   :  { %559 = vmatpush.msrb.mxu1 %v1122_v6 }
  0x12   :  { %488 = vmatpush.msrb.mxu3 %v1130_v7  ;;  %199 = vmatpush.msra.mxu2 %v1122_v6 }
  0x13   :  { %560 = vmatpush.msrb.mxu1 %v1130_v7 }
  0x14   :  { %200 = vmatpush.msra.mxu2 %v1130_v7 }
  0x16   :  { %413 = vmatpush.msrb.mxu2 %v1103_v3 }
  0x17   :  { %889 = vmatmul.msk.f32.gmra.mxu0 %vm35_vm0, %v23_v2 }
  0x18   :  { %414 = vmatpush.msrb.mxu2 %v1114_v5 }
  0x1a   :  { %415 = vmatpush.msrb.mxu2 %v1122_v6 }
  0x1c   :  { %416 = vmatpush.msrb.mxu2 %v1130_v7 }
  0x82   :  { %v77_v10 = vpop.f32.mrf.mxu0 }
  0x83   :  { %v78_v12 = vadd.f32 %v1158_v11, %v77_v10 }
  0x88   :  { %v1153_v9 = vpop.f32.mrf.mxu2 }
  0x8c   :  { %v80_v39 = vpop.f32.mrf.mxu0 }
  0x8d   :  { %v81_v40 = vadd.f32 %v1158_v11, %v80_v39 }
  0x90   :  { %v135_v13 = vpop.f32.mrf.mxu2 }
  0x91   :  { %v138_v14 = vadd.f32 %v135_v13, %v78_v12 }
  0x93   :  { %v895_v15 = vmul.f32 -1.442695, %v138_v14  ;;  %932 = vtanh.f32 %v138_v14 }
  0x94   :  { %v83_v4 = vpop.f32.mrf.mxu0 }
  0x95   :  { %934 = vpow2.f32 %v895_v15 }
  0x99   :  { %v933_v16 = vpop.eup %932 }
  0x9a   :  { %160 = vrot.lane.b32.xlu0 %v933_v16, %s1055_s9 }
  0x9b   :  { %v935_v17 = vpop.eup %934 }
  0x9c   :  { %v142_v18 = vadd.f32 1.0, %v935_v17 }
  0x9e   :  { %936 = vrcp.f32 %v142_v18  ;;  %v154_v22 = vand.u32 2147483648, %v142_v18  ;;  %v152_v24 = vand.u32 2147483647, %v142_v18  ;;  %vm148_vm2 = vweird.f32 %v142_v18 }
  0xa0   :  { %v155_v26 = vor.u32 1.1754944e-38, %v154_v22  ;;  %vm153_vm4 = vcmp.eq.f32.partialorder %v152_v24, 8.507059e+37 }
  0xa4   :  { %v937_v19 = vpop.eup %936 }
  0xa5   :  { %v144_v20 = vmul.f32 %v937_v19, %v142_v18  ;;  %vm149_vm1 = vweird.f32 %v937_v19 }
  0xa6   :  { %vm150_vm3 = vmor %vm148_vm2, %vm149_vm1 }
  0xa7   :  { %v145_v21 = vsub.f32 1.0, %v144_v20 }
  0xa9   :  { %v146_v23 = vmul.f32 %v937_v19, %v145_v21 }
  0xab   :  { %v147_v25 = vadd.f32 %v937_v19, %v146_v23 }
  0xad   :  { %v151_v27 = vsel %vm150_vm3, %v937_v19, %v147_v25 }
  0xae   :  { %v156_v28 = vsel %vm153_vm4, %v155_v26, %v151_v27 }
  0xaf   :  { %v164_v29 = vmul.f32 0.0, %v156_v28 }
  0xb1   :  { %166 = vrot.lane.b32.xlu0 %v164_v29, %s1056_s2 }
 0x10c   :  { %v161_v30 = vpop.permute.xlu0 %160 }
 0x10d   :  { %v163_v31 = vmul.f32 %v161_v30, %v156_v28 }
 0x123   :  { %v167_v32 = vpop.permute.xlu0 %166 }
 0x124   :  { %v169_v33 = vadd.f32 %v167_v32, %v163_v31  ;;  %v24_v31 = vld [vmem:[%s1297_s0 + $0x18] sm:$0xff] }
 0x125   :  { %890 = vmatmul.msk.f32.gmra.mxu0 %vm35_vm0, %v24_v31  ;;  %v26_v31 = vld [vmem:[%s1297_s0 + $0x28] sm:$0xff] }
 0x126   :  { %938 = vtanh.f32 %v169_v33  ;;  %232 = vrot.lane.b32.xlu2 %v169_v33, %s1057_s10 }
 0x12c   :  { %v939_v34 = vpop.eup %938 }
 0x12d   :  { %172 = vrot.lane.b32.xlu1 %v939_v34, %s1056_s2 }
 0x180   :  { %v233_v56 = vpop.permute.xlu2 %232 }
 0x19f   :  { %v173_v35 = vpop.permute.xlu1 %172 }
 0x1a0   :  { %v175_v36 = vmul.f32 %v173_v35, %v156_v28 }
 0x1a2   :  { %177 = vrot.lane.b32.xlu1 %v175_v36, %s1055_s9  ;;  %v86_v35 = vpop.f32.mrf.mxu0 }
 0x1a3   :  { %v87_v36 = vadd.f32 %v1158_v11, %v86_v35 }
 0x214   :  { %v178_v38 = vpop.permute.xlu1 %177 }
 0x215   :  { %180 = vst.msk [vmem:[#allocation3] sm:$0xff] %vm114_vm5, %v178_v38  ;;  %896 = vmatmul.msk.f32.vlgmr.msra.gmra.mxu2 %vm114_vm5, %v178_v38 }
 0x216   :  { %629 = vmatpush.msra.mxu2 %v1103_v3 }
 0x218   :  { %630 = vmatpush.msra.mxu2 %v1114_v5  ;;  %v84_v5 = vadd.f32 %v1158_v11, %v83_v4 }
 0x21a   :  { %631 = vmatpush.msra.mxu2 %v1122_v6 }
 0x21c   :  { %632 = vmatpush.msra.mxu2 %v1130_v7 }
 0x298   :  { %v202_v41 = vpop.f32.mrf.mxu2 }
 0x299   :  { %v205_v42 = vadd.f32 %v202_v41, %v81_v40 }
 0x29b   :  { %v897_v43 = vmul.f32 -1.442695, %v205_v42  ;;  %940 = vtanh.f32 %v205_v42 }
 0x29d   :  { %942 = vpow2.f32 %v897_v43 }
 0x2a1   :  { %v941_v44 = vpop.eup %940 }
 0x2a2   :  { %227 = vrot.lane.b32.xlu2 %v941_v44, %s1055_s9 }
 0x2a3   :  { %v943_v45 = vpop.eup %942 }
 0x2a4   :  { %v209_v46 = vadd.f32 1.0, %v943_v45 }
 0x2a6   :  { %944 = vrcp.f32 %v209_v46  ;;  %v221_v50 = vand.u32 2147483648, %v209_v46  ;;  %v219_v52 = vand.u32 2147483647, %v209_v46  ;;  %vm215_vm7 = vweird.f32 %v209_v46 }
 0x2a8   :  { %v222_v54 = vor.u32 1.1754944e-38, %v221_v50  ;;  %vm220_vm9 = vcmp.eq.f32.partialorder %v219_v52, 8.507059e+37 }
 0x2ac   :  { %v945_v47 = vpop.eup %944 }
 0x2ad   :  { %v211_v48 = vmul.f32 %v945_v47, %v209_v46  ;;  %vm216_vm6 = vweird.f32 %v945_v47 }
 0x2ae   :  { %vm217_vm8 = vmor %vm215_vm7, %vm216_vm6 }
 0x2af   :  { %v212_v49 = vsub.f32 1.0, %v211_v48 }
 0x2b1   :  { %v213_v51 = vmul.f32 %v945_v47, %v212_v49 }
 0x2b3   :  { %v214_v53 = vadd.f32 %v945_v47, %v213_v51 }
 0x2b5   :  { %v218_v55 = vsel %vm217_vm8, %v945_v47, %v214_v53 }
 0x2b6   :  { %v223_v57 = vsel %vm220_vm9, %v222_v54, %v218_v55 }
 0x2b7   :  { %v235_v58 = vmul.f32 %v233_v56, %v223_v57 }
 0x2b9   :  { %237 = vrot.lane.b32.xlu0 %v235_v58, %s1056_s2 }
 0x2fc   :  { %v228_v59 = vpop.permute.xlu2 %227 }
 0x2fd   :  { %v230_v60 = vmul.f32 %v228_v59, %v223_v57 }
 0x32b   :  { %v238_v61 = vpop.permute.xlu0 %237 }
 0x32c   :  { %v240_v62 = vadd.f32 %v238_v61, %v230_v60 }
 0x32e   :  { %946 = vtanh.f32 %v240_v62  ;;  %304 = vrot.lane.b32.xlu0 %v240_v62, %s1057_s10  ;;  %v25_v62 = vld [vmem:[%s1297_s0 + $0x20] sm:$0xff] }
 0x32f   :  { %891 = vmatmul.msk.f32.gmra.mxu0 %vm35_vm0, %v25_v62 }
 0x334   :  { %v947_v63 = vpop.eup %946 }
 0x335   :  { %243 = vrot.lane.b32.xlu1 %v947_v63, %s1056_s2 }
 0x337   :  { %892 = vmatmul.msk.f32.gmra.mxu0 %vm35_vm0, %v26_v31 }
 0x3a0   :  { %v305_v23 = vpop.permute.xlu0 %304 }
 0x3a7   :  { %v244_v0 = vpop.permute.xlu1 %243 }
 0x3a8   :  { %v246_v1 = vmul.f32 %v244_v0, %v223_v57 }
 0x3aa   :  { %248 = vrot.lane.b32.xlu2 %v246_v1, %s1055_s9 }
 0x3ac   :  { %v89_v0 = vpop.f32.mrf.mxu0 }
 0x3ad   :  { %v90_v1 = vadd.f32 %v1158_v11, %v89_v0 }
 0x404   :  { %v249_v3 = vpop.permute.xlu2 %248 }
 0x405   :  { %252 = vst.msk [vmem:[#allocation3 + $0x8] sm:$0xff] %vm114_vm5, %v249_v3  ;;  %898 = vmatmul.msk.f32.vlgmr.msra.gmra.mxu3 %vm114_vm5, %v249_v3 }
 0x488   :  { %v274_v6 = vpop.f32.mrf.mxu3 }
 0x489   :  { %v277_v7 = vadd.f32 %v274_v6, %v84_v5 }
 0x48b   :  { %v899_v8 = vmul.f32 -1.442695, %v277_v7  ;;  %948 = vtanh.f32 %v277_v7 }
 0x48d   :  { %950 = vpow2.f32 %v899_v8 }
 0x491   :  { %v949_v10 = vpop.eup %948 }
 0x492   :  { %299 = vrot.lane.b32.xlu1 %v949_v10, %s1055_s9 }
 0x493   :  { %v951_v12 = vpop.eup %950 }
 0x494   :  { %v281_v13 = vadd.f32 1.0, %v951_v12 }
 0x496   :  { %952 = vrcp.f32 %v281_v13  ;;  %v293_v17 = vand.u32 2147483648, %v281_v13  ;;  %v291_v19 = vand.u32 2147483647, %v281_v13  ;;  %vm287_vm11 = vweird.f32 %v281_v13 }
 0x498   :  { %v294_v21 = vor.u32 1.1754944e-38, %v293_v17  ;;  %vm292_vm13 = vcmp.eq.f32.partialorder %v291_v19, 8.507059e+37 }
 0x49c   :  { %v953_v14 = vpop.eup %952 }
 0x49d   :  { %v283_v15 = vmul.f32 %v953_v14, %v281_v13  ;;  %vm288_vm10 = vweird.f32 %v953_v14 }
 0x49e   :  { %vm289_vm12 = vmor %vm287_vm11, %vm288_vm10 }
 0x49f   :  { %v284_v16 = vsub.f32 1.0, %v283_v15 }
 0x4a1   :  { %v285_v18 = vmul.f32 %v953_v14, %v284_v16 }
 0x4a3   :  { %v286_v20 = vadd.f32 %v953_v14, %v285_v18 }
 0x4a5   :  { %v290_v22 = vsel %vm289_vm12, %v953_v14, %v286_v20 }
 0x4a6   :  { %v295_v24 = vsel %vm292_vm13, %v294_v21, %v290_v22 }
 0x4a7   :  { %v307_v25 = vmul.f32 %v305_v23, %v295_v24 }
 0x4a9   :  { %309 = vrot.lane.b32.xlu2 %v307_v25, %s1056_s2 }
 0x503   :  { %v310_v28 = vpop.permute.xlu2 %309 }
 0x504   :  { %v300_v26 = vpop.permute.xlu1 %299 }
 0x505   :  { %v302_v27 = vmul.f32 %v300_v26, %v295_v24 }
 0x507   :  { %v312_v29 = vadd.f32 %v310_v28, %v302_v27 }
 0x509   :  { %954 = vtanh.f32 %v312_v29  ;;  %376 = vrot.lane.b32.xlu2 %v312_v29, %s1057_s10  ;;  %v696_v29 = vld [vmem:[%s1301_s4 + $0x18] sm:$0xff] }
 0x50a   :  { %920 = vmatpush.msra.mxu3 %v696_v29 }
 0x50f   :  { %v955_v30 = vpop.eup %954 }
 0x510   :  { %315 = vrot.lane.b32.xlu0 %v955_v30, %s1056_s2  ;;  %v695_v30 = vld [vmem:[%s1301_s4 + $0x10] sm:$0xff] }
 0x511   :  { %921 = vmatpush.msra.mxu3 %v695_v30 }
 0x563   :  { %v377_v52 = vpop.permute.xlu2 %376 }
 0x582   :  { %v316_v32 = vpop.permute.xlu0 %315 }
 0x583   :  { %v318_v33 = vmul.f32 %v316_v32, %v295_v24  ;;  %v694_v32 = vld [vmem:[%s1301_s4 + $0x8] sm:$0xff] }
 0x584   :  { %922 = vmatpush.msra.mxu3 %v694_v32 }
 0x585   :  { %320 = vrot.lane.b32.xlu1 %v318_v33, %s1055_s9  ;;  %v693_v33 = vld [vmem:[%s1301_s4] sm:$0xff] }
 0x586   :  { %923 = vmatpush.msra.mxu3 %v693_v33 }
 0x5f7   :  { %v321_v34 = vpop.permute.xlu1 %320 }
 0x5f8   :  { %324 = vst.msk [vmem:[#allocation3 + $0x10] sm:$0xff] %vm114_vm5, %v321_v34  ;;  %900 = vmatmul.msk.f32.vlgmr.msra.gmra.mxu1 %vm114_vm5, %v321_v34 }
 0x5f9   :  { %733 = vmatpush.msra.mxu1 %v696_v29 }
 0x5fb   :  { %734 = vmatpush.msra.mxu1 %v695_v30 }
 0x5fd   :  { %735 = vmatpush.msra.mxu1 %v694_v32 }
 0x5ff   :  { %736 = vmatpush.msra.mxu1 %v693_v33 }
 0x675   :  { %v346_v37 = vpop.f32.mrf.mxu1 }
 0x676   :  { %v349_v38 = vadd.f32 %v346_v37, %v87_v36  ;;  %v92_v36 = vpop.f32.mrf.mxu0 }
 0x677   :  { %v93_v37 = vadd.f32 %v1158_v11, %v92_v36 }
 0x678   :  { %v901_v39 = vmul.f32 -1.442695, %v349_v38  ;;  %956 = vtanh.f32 %v349_v38 }
 0x67a   :  { %958 = vpow2.f32 %v901_v39 }
 0x67e   :  { %v957_v40 = vpop.eup %956 }
 0x67f   :  { %371 = vrot.lane.b32.xlu0 %v957_v40, %s1055_s9 }
 0x680   :  { %v959_v41 = vpop.eup %958 }
 0x681   :  { %v353_v42 = vadd.f32 1.0, %v959_v41 }
 0x683   :  { %960 = vrcp.f32 %v353_v42  ;;  %v365_v46 = vand.u32 2147483648, %v353_v42  ;;  %v363_v48 = vand.u32 2147483647, %v353_v42  ;;  %vm359_vm15 = vweird.f32 %v353_v42 }
 0x685   :  { %v366_v50 = vor.u32 1.1754944e-38, %v365_v46  ;;  %vm364_vm2 = vcmp.eq.f32.partialorder %v363_v48, 8.507059e+37 }
 0x689   :  { %v961_v43 = vpop.eup %960 }
 0x68a   :  { %v355_v44 = vmul.f32 %v961_v43, %v353_v42  ;;  %vm360_vm14 = vweird.f32 %v961_v43 }
 0x68b   :  { %vm361_vm1 = vmor %vm359_vm15, %vm360_vm14 }
 0x68c   :  { %v356_v45 = vsub.f32 1.0, %v355_v44 }
 0x68e   :  { %v357_v47 = vmul.f32 %v961_v43, %v356_v45 }
 0x690   :  { %v358_v49 = vadd.f32 %v961_v43, %v357_v47 }
 0x692   :  { %v362_v51 = vsel %vm361_vm1, %v961_v43, %v358_v49 }
 0x693   :  { %v367_v53 = vsel %vm364_vm2, %v366_v50, %v362_v51 }
 0x694   :  { %v379_v54 = vmul.f32 %v377_v52, %v367_v53 }
 0x696   :  { %381 = vrot.lane.b32.xlu1 %v379_v54, %s1056_s2 }
 0x6f1   :  { %v372_v55 = vpop.permute.xlu0 %371 }
 0x6f2   :  { %v374_v56 = vmul.f32 %v372_v55, %v367_v53 }
 0x708   :  { %v382_v57 = vpop.permute.xlu1 %381 }
 0x709   :  { %v384_v58 = vadd.f32 %v382_v57, %v374_v56 }
 0x70b   :  { %962 = vtanh.f32 %v384_v58  ;;  %448 = vrot.lane.b32.xlu1 %v384_v58, %s1057_s10 }
 0x711   :  { %v963_v59 = vpop.eup %962 }
 0x712   :  { %387 = vrot.lane.b32.xlu2 %v963_v59, %s1056_s2 }
 0x76c   :  { %v388_v60 = vpop.permute.xlu2 %387 }
 0x76d   :  { %v390_v61 = vmul.f32 %v388_v60, %v367_v53 }
 0x76f   :  { %392 = vrot.lane.b32.xlu0 %v390_v61, %s1055_s9  ;;  %v27_v61 = vld [vmem:[%s1297_s0 + $0x30] sm:$0xff]  ;;  %s1058_s0 = smov [#allocation4]  }
 0x770   :  { %893 = vmatmul.msk.f32.gmra.mxu0 %vm35_vm0, %v27_v61  ;;  %s873_s29 = sshll.u32 %s1058_s0, 4  ;;  %s874_s29 = int_to_ptr.vmem [resolvable:$true] %s873_s29 }
 0x77d   :  { %v449_v19 = vpop.permute.xlu1 %448 }
 0x7e1   :  { %v393_v63 = vpop.permute.xlu0 %392 }
 0x7e2   :  { %396 = vst.msk [vmem:[#allocation3 + $0x18] sm:$0xff] %vm114_vm5, %v393_v63  ;;  %902 = vmatmul.msk.f32.vlgmr.msrb.gmra.mxu2 %vm114_vm5, %v393_v63 }
 0x865   :  { %v418_v2 = vpop.f32.mrf.mxu2 }
 0x866   :  { %v421_v3 = vadd.f32 %v418_v2, %v90_v1  ;;  %v685_v1 = vld [vmem:[#allocation3] sm:$0xff] }
 0x868   :  { %v903_v4 = vmul.f32 -1.442695, %v421_v3  ;;  %964 = vtanh.f32 %v421_v3  ;;  %v686_v3 = vld [vmem:[#allocation3 + $0x8] sm:$0xff] }
 0x86a   :  { %966 = vpow2.f32 %v903_v4  ;;  %v687_v4 = vld [vmem:[#allocation3 + $0x10] sm:$0xff] }
 0x86e   :  { %v965_v5 = vpop.eup %964 }
 0x86f   :  { %443 = vrot.lane.b32.xlu2 %v965_v5, %s1055_s9  ;;  %v688_v5 = vld [vmem:[#allocation3 + $0x18] sm:$0xff] }
 0x870   :  { %v967_v6 = vpop.eup %966 }
 0x871   :  { %v425_v7 = vadd.f32 1.0, %v967_v6  ;;  %v95_v6 = vpop.f32.mrf.mxu0 }
 0x873   :  { %968 = vrcp.f32 %v425_v7  ;;  %v437_v13 = vand.u32 2147483648, %v425_v7  ;;  %v435_v15 = vand.u32 2147483647, %v425_v7  ;;  %vm431_vm4 = vweird.f32 %v425_v7 }
 0x875   :  { %v438_v17 = vor.u32 1.1754944e-38, %v437_v13  ;;  %vm436_vm7 = vcmp.eq.f32.partialorder %v435_v15, 8.507059e+37 }
 0x879   :  { %v969_v8 = vpop.eup %968 }
 0x87a   :  { %v427_v10 = vmul.f32 %v969_v8, %v425_v7  ;;  %vm432_vm3 = vweird.f32 %v969_v8  ;;  %v96_v7 = vadd.f32 %v1158_v11, %v95_v6 }
 0x87b   :  { %vm433_vm6 = vmor %vm431_vm4, %vm432_vm3 }
 0x87c   :  { %v428_v12 = vsub.f32 1.0, %v427_v10 }
 0x87e   :  { %v429_v14 = vmul.f32 %v969_v8, %v428_v12 }
 0x880   :  { %v430_v16 = vadd.f32 %v969_v8, %v429_v14 }
 0x882   :  { %v434_v18 = vsel %vm433_vm6, %v969_v8, %v430_v16 }
 0x883   :  { %v439_v20 = vsel %vm436_vm7, %v438_v17, %v434_v18 }
 0x884   :  { %v451_v21 = vmul.f32 %v449_v19, %v439_v20 }
 0x886   :  { %453 = vrot.lane.b32.xlu0 %v451_v21, %s1056_s2 }
 0x8c9   :  { %v444_v22 = vpop.permute.xlu2 %443 }
 0x8ca   :  { %v446_v23 = vmul.f32 %v444_v22, %v439_v20 }
 0x8f8   :  { %v454_v24 = vpop.permute.xlu0 %453 }
 0x8f9   :  { %v456_v25 = vadd.f32 %v454_v24, %v446_v23 }
 0x8fb   :  { %970 = vtanh.f32 %v456_v25  ;;  %520 = vrot.lane.b32.xlu0 %v456_v25, %s1057_s10 }
 0x901   :  { %v971_v26 = vpop.eup %970 }
 0x902   :  { %459 = vrot.lane.b32.xlu1 %v971_v26, %s1056_s2 }
 0x96d   :  { %v521_v53 = vpop.permute.xlu0 %520 }
 0x974   :  { %v460_v27 = vpop.permute.xlu1 %459 }
 0x975   :  { %v462_v28 = vmul.f32 %v460_v27, %v439_v20 }
 0x977   :  { %464 = vrot.lane.b32.xlu2 %v462_v28, %s1055_s9 }
 0x9d1   :  { %v465_v34 = vpop.permute.xlu2 %464 }
 0x9d2   :  { %468 = vst.msk [vmem:[#allocation3 + $0x20] sm:$0xff] %vm114_vm5, %v465_v34  ;;  %904 = vmatmul.msk.f32.vlgmr.msrb.gmra.mxu3 %vm114_vm5, %v465_v34 }
 0x9d9   :  { %v689_v35 = vld [vmem:[#allocation3 + $0x20] sm:$0xff] }
 0x9da   :  { %914 = vmatmul.msk.f32.vlgmr.msra.gmra.mxu3 %vm114_vm5, %v689_v35 }
 0xa55   :  { %v490_v38 = vpop.f32.mrf.mxu3 }
 0xa56   :  { %v493_v39 = vadd.f32 %v490_v38, %v93_v37  ;;  %v99_v37 = vadd.f32 %v1158_v11, %v1153_v9 }
 0xa58   :  { %v905_v40 = vmul.f32 -1.442695, %v493_v39  ;;  %972 = vtanh.f32 %v493_v39 }
 0xa5a   :  { %974 = vpow2.f32 %v905_v40 }
 0xa5e   :  { %v973_v41 = vpop.eup %972 }
 0xa5f   :  { %515 = vrot.lane.b32.xlu1 %v973_v41, %s1055_s9 }
 0xa60   :  { %v975_v42 = vpop.eup %974 }
 0xa61   :  { %v497_v43 = vadd.f32 1.0, %v975_v42 }
 0xa63   :  { %976 = vrcp.f32 %v497_v43  ;;  %v509_v47 = vand.u32 2147483648, %v497_v43  ;;  %v507_v49 = vand.u32 2147483647, %v497_v43  ;;  %vm503_vm9 = vweird.f32 %v497_v43 }
 0xa65   :  { %v510_v51 = vor.u32 1.1754944e-38, %v509_v47  ;;  %vm508_vm11 = vcmp.eq.f32.partialorder %v507_v49, 8.507059e+37 }
 0xa69   :  { %v977_v44 = vpop.eup %976 }
 0xa6a   :  { %v499_v45 = vmul.f32 %v977_v44, %v497_v43  ;;  %vm504_vm8 = vweird.f32 %v977_v44 }
 0xa6b   :  { %vm505_vm10 = vmor %vm503_vm9, %vm504_vm8 }
 0xa6c   :  { %v500_v46 = vsub.f32 1.0, %v499_v45 }
 0xa6e   :  { %v501_v48 = vmul.f32 %v977_v44, %v500_v46 }
 0xa70   :  { %v502_v50 = vadd.f32 %v977_v44, %v501_v48 }
 0xa72   :  { %v506_v52 = vsel %vm505_vm10, %v977_v44, %v502_v50 }
 0xa73   :  { %v511_v54 = vsel %vm508_vm11, %v510_v51, %v506_v52 }
 0xa74   :  { %v523_v55 = vmul.f32 %v521_v53, %v511_v54 }
 0xa76   :  { %525 = vrot.lane.b32.xlu2 %v523_v55, %s1056_s2 }
 0xad0   :  { %v526_v58 = vpop.permute.xlu2 %525 }
 0xad1   :  { %v516_v56 = vpop.permute.xlu1 %515 }
 0xad2   :  { %v518_v57 = vmul.f32 %v516_v56, %v511_v54 }
 0xad4   :  { %v528_v59 = vadd.f32 %v526_v58, %v518_v57 }
 0xad6   :  { %978 = vtanh.f32 %v528_v59  ;;  %592 = vrot.lane.b32.xlu2 %v528_v59, %s1057_s10  ;;  %v750_v59 = vpop.f32.mrf.mxu3 }
 0xadc   :  { %v979_v60 = vpop.eup %978 }
 0xadd   :  { %531 = vrot.lane.b32.xlu0 %v979_v60, %s1056_s2  ;;  %v766_v60 = vmul.f32 0.999995, %v750_v59 }
 0xb30   :  { %v593_v25 = vpop.permute.xlu2 %592 }
 0xb4f   :  { %v532_v62 = vpop.permute.xlu0 %531 }
 0xb50   :  { %v534_v63 = vmul.f32 %v532_v62, %v511_v54  ;;  %v770_v54 = vlaneseq }
 0xb52   :  { %536 = vrot.lane.b32.xlu1 %v534_v63, %s1055_s9  ;;  %v1267_v56 = vand.u32 127, %v770_v54 }
 0xb54   :  { %vm772_vm4 = vcmp.lt.s32.totalorder %v1267_v56, 16 }
 0xb55   :  { %v777_v61 = vsel %vm772_vm4, %v766_v60, -1e+30 }
 0xbc4   :  { %v537_v0 = vpop.permute.xlu1 %536 }
 0xbc5   :  { %540 = vst.msk [vmem:[#allocation3 + $0x28] sm:$0xff] %vm114_vm5, %v537_v0  ;;  %906 = vmatmul.msk.f32.vlgmr.msrb.gmra.mxu1 %vm114_vm5, %v537_v0 }
 0xbcc   :  { %v690_v2 = vld [vmem:[#allocation3 + $0x28] sm:$0xff] }
 0xbcd   :  { %910 = vmatmul.msk.f32.vlgmr.msra.gmra.mxu1 %vm114_vm5, %v685_v1  ;;  %915 = vmatmul.msk.f32.gmra.mxu3 %vm114_vm5, %v690_v2 }
 0xbd5   :  { %911 = vmatmul.msk.f32.gmra.mxu1 %vm114_vm5, %v686_v3 }
 0xbdd   :  { %912 = vmatmul.msk.f32.gmra.mxu1 %vm114_vm5, %v687_v4 }
 0xbe5   :  { %913 = vmatmul.msk.f32.gmra.mxu1 %vm114_vm5, %v688_v5 }
 0xc42   :  { %v562_v8 = vpop.f32.mrf.mxu1 }
 0xc43   :  { %v565_v10 = vadd.f32 %v562_v8, %v96_v7 }
 0xc45   :  { %v907_v12 = vmul.f32 -1.442695, %v565_v10  ;;  %980 = vtanh.f32 %v565_v10 }
 0xc47   :  { %982 = vpow2.f32 %v907_v12 }
 0xc4a   :  { %v738_v55 = vpop.f32.mrf.mxu1 }
 0xc4b   :  { %v981_v13 = vpop.eup %980  ;;  %v762_v57 = vmul.f32 0.999995, %v738_v55 }
 0xc4c   :  { %587 = vrot.lane.b32.xlu0 %v981_v13, %s1055_s9 }
 0xc4d   :  { %v983_v14 = vpop.eup %982  ;;  %v773_v58 = vsel %vm772_vm4, %v762_v57, -1e+30 }
 0xc4e   :  { %v569_v15 = vadd.f32 1.0, %v983_v14 }
 0xc50   :  { %984 = vrcp.f32 %v569_v15  ;;  %v581_v19 = vand.u32 2147483648, %v569_v15  ;;  %v579_v21 = vand.u32 2147483647, %v569_v15  ;;  %vm575_vm12 = vweird.f32 %v569_v15  ;;  %v753_v7 = vpop.f32.mrf.mxu3 }
 0xc51   :  { %v767_v10 = vmul.f32 0.999995, %v753_v7 }
 0xc52   :  { %v582_v23 = vor.u32 1.1754944e-38, %v581_v19  ;;  %vm580_vm14 = vcmp.eq.f32.partialorder %v579_v21, 8.507059e+37  ;;  %v741_v3 = vpop.f32.mrf.mxu1 }
 0xc53   :  { %v763_v4 = vmul.f32 0.999995, %v741_v3  ;;  %v1279_v13 = vsel %vm772_vm4, %v767_v10, -1e+30 }
 0xc55   :  { %v774_v6 = vsel %vm772_vm4, %v763_v4, -1e+30 }
 0xc56   :  { %v985_v16 = vpop.eup %984 }
 0xc57   :  { %v571_v17 = vmul.f32 %v985_v16, %v569_v15  ;;  %vm576_vm0 = vweird.f32 %v985_v16 }
 0xc58   :  { %vm577_vm13 = vmor %vm575_vm12, %vm576_vm0 }
 0xc59   :  { %v572_v18 = vsub.f32 1.0, %v571_v17 }
 0xc5a   :  { %v744_v17 = vpop.f32.mrf.mxu1 }
 0xc5b   :  { %v573_v20 = vmul.f32 %v985_v16, %v572_v18  ;;  %v764_v18 = vmul.f32 0.999995, %v744_v17 }
 0xc5d   :  { %v574_v22 = vadd.f32 %v985_v16, %v573_v20  ;;  %v775_v20 = vsel %vm772_vm4, %v764_v18, -1e+30 }
 0xc5f   :  { %v578_v24 = vsel %vm577_vm13, %v985_v16, %v574_v22 }
 0xc60   :  { %v583_v26 = vsel %vm580_vm14, %v582_v23, %v578_v24 }
 0xc61   :  { %v595_v27 = vmul.f32 %v593_v25, %v583_v26 }
 0xc62   :  { %v747_v21 = vpop.f32.mrf.mxu1 }
 0xc63   :  { %597 = vrot.lane.b32.xlu1 %v595_v27, %s1056_s2  ;;  %v765_v22 = vmul.f32 0.999995, %v747_v21 }
 0xc65   :  { %v776_v24 = vsel %vm772_vm4, %v765_v22, -1e+30 }
 0xcbe   :  { %v588_v28 = vpop.permute.xlu0 %587 }
 0xcbf   :  { %v590_v29 = vmul.f32 %v588_v28, %v583_v26 }
 0xcd5   :  { %v598_v30 = vpop.permute.xlu1 %597 }
 0xcd6   :  { %v600_v31 = vadd.f32 %v598_v30, %v590_v29 }
 0xcd8   :  { %986 = vtanh.f32 %v600_v31  ;;  %664 = vrot.lane.b32.xlu1 %v600_v31, %s1057_s10 }
 0xcde   :  { %v987_v32 = vpop.eup %986 }
 0xcdf   :  { %603 = vrot.lane.b32.xlu2 %v987_v32, %s1056_s2 }
 0xd39   :  { %v604_v33 = vpop.permute.xlu2 %603 }
 0xd3a   :  { %v606_v34 = vmul.f32 %v604_v33, %v583_v26 }
 0xd3c   :  { %608 = vrot.lane.b32.xlu0 %v606_v34, %s1055_s9 }
 0xd4a   :  { %v665_v51 = vpop.permute.xlu1 %664 }
 0xdae   :  { %v609_v35 = vpop.permute.xlu0 %608 }
 0xdaf   :  { %612 = vst.msk [vmem:[#allocation3 + $0x30] sm:$0xff] %vm114_vm5, %v609_v35  ;;  %908 = vmatmul.msk.f32.vlgmr.msra.gmra.mxu2 %vm114_vm5, %v609_v35 }
 0xdb6   :  { %v691_v36 = vld [vmem:[#allocation3 + $0x30] sm:$0xff] }
 0xdb7   :  { %916 = vmatmul.msk.f32.gmra.mxu3 %vm114_vm5, %v691_v36 }
 0xe32   :  { %v634_v38 = vpop.f32.mrf.mxu2 }
 0xe33   :  { %v637_v39 = vadd.f32 %v634_v38, %v99_v37 }
 0xe35   :  { %v909_v40 = vmul.f32 -1.442695, %v637_v39  ;;  %988 = vtanh.f32 %v637_v39 }
 0xe37   :  { %990 = vpow2.f32 %v909_v40 }
 0xe3a   :  { %v756_v25 = vpop.f32.mrf.mxu3 }
 0xe3b   :  { %v989_v41 = vpop.eup %988  ;;  %v768_v27 = vmul.f32 0.999995, %v756_v25 }
 0xe3c   :  { %659 = vrot.lane.b32.xlu2 %v989_v41, %s1055_s9 }
 0xe3d   :  { %v991_v42 = vpop.eup %990  ;;  %v779_v31 = vsel %vm772_vm4, %v768_v27, -1e+30 }
 0xe3e   :  { %v641_v43 = vadd.f32 1.0, %v991_v42 }
 0xe40   :  { %992 = vrcp.f32 %v641_v43  ;;  %v653_v47 = vand.u32 2147483648, %v641_v43  ;;  %v651_v49 = vand.u32 2147483647, %v641_v43  ;;  %vm647_vm1 = vweird.f32 %v641_v43 }
 0xe42   :  { %v654_v9 = vor.u32 1.1754944e-38, %v653_v47  ;;  %vm652_vm3 = vcmp.eq.f32.partialorder %v651_v49, 8.507059e+37 }
 0xe46   :  { %v993_v44 = vpop.eup %992 }
 0xe47   :  { %v643_v45 = vmul.f32 %v993_v44, %v641_v43  ;;  %vm648_vm15 = vweird.f32 %v993_v44 }
 0xe48   :  { %vm649_vm2 = vmor %vm647_vm1, %vm648_vm15 }
 0xe49   :  { %v644_v46 = vsub.f32 1.0, %v643_v45 }
 0xe4b   :  { %v645_v48 = vmul.f32 %v993_v44, %v644_v46 }
 0xe4d   :  { %v646_v50 = vadd.f32 %v993_v44, %v645_v48 }
 0xe4f   :  { %v650_v11 = vsel %vm649_vm2, %v993_v44, %v646_v50 }
 0xe50   :  { %v655_v52 = vsel %vm652_vm3, %v654_v9, %v650_v11 }
 0xe51   :  { %v667_v53 = vmul.f32 %v665_v51, %v655_v52 }
 0xe53   :  { %669 = vrot.lane.b32.xlu0 %v667_v53, %s1056_s2 }
 0xe7d   :  { %781 = vmax.xlane.f32.xlu0 %v773_v58 }
 0xe85   :  { %789 = vmax.xlane.f32.xlu0 %v777_v61 }
 0xe96   :  { %v660_v62 = vpop.permute.xlu2 %659 }
 0xe97   :  { %v662_v63 = vmul.f32 %v660_v62, %v655_v52 }
 0xec5   :  { %v670_v0 = vpop.permute.xlu0 %669 }
 0xec6   :  { %v672_v1 = vadd.f32 %v670_v0, %v662_v63 }
 0xec8   :  { %994 = vtanh.f32 %v672_v1 }
 0xece   :  { %v995_v2 = vpop.eup %994 }
 0xecf   :  { %675 = vrot.lane.b32.xlu1 %v995_v2, %s1056_s2 }
 0xef0   :  { %v782_v5 = vpop.xlane.xlu0 %781 }
 0xef1   :  { %v797_v8 = vsub.f32 %v773_v58, %v782_v5 }
 0xef3   :  { %v805_v12 = vmul.f32 1.442695, %v797_v8 }
 0xef5   :  { %996 = vpow2.f32 %v805_v12 }
 0xef8   :  { %v790_v29 = vpop.xlane.xlu0 %789 }
 0xef9   :  { %783 = vmax.xlane.f32.xlu1 %v774_v6  ;;  %v801_v32 = vsub.f32 %v777_v61, %v790_v29 }
 0xefb   :  { %v997_v14 = vpop.eup %996  ;;  %v813_v33 = vmul.f32 1.442695, %v801_v32 }
 0xf01   :  { %791 = vmax.xlane.f32.xlu1 %v1279_v13 }
 0xf09   :  { %821 = vadd.xlane.f32.xlu1 %v997_v14 }
 0xf41   :  { %v676_v15 = vpop.permute.xlu1 %675 }
 0xf42   :  { %v678_v16 = vmul.f32 %v676_v15, %v655_v52 }
 0xf44   :  { %680 = vrot.lane.b32.xlu2 %v678_v16, %s1055_s9 }
 0xf6c   :  { %v784_v19 = vpop.xlane.xlu1 %783 }
 0xf6d   :  { %785 = vmax.xlane.f32.xlu2 %v775_v20  ;;  %v798_v26 = vsub.f32 %v774_v6, %v784_v19 }
 0xf6f   :  { %v807_v28 = vmul.f32 1.442695, %v798_v26 }
 0xf74   :  { %v792_v23 = vpop.xlane.xlu1 %791 }
 0xf75   :  { %787 = vmax.xlane.f32.xlu2 %v776_v24  ;;  %v802_v62 = vsub.f32 %v1279_v13, %v792_v23 }
 0xf77   :  { %v815_v63 = vmul.f32 1.442695, %v802_v62 }
 0xf7c   :  { %v822_v30 = vpop.xlane.xlu1 %821 }
 0xf7d   :  { %998 = vlog2.f32 %v822_v30  ;;  %793 = vmax.xlane.f32.xlu2 %v779_v31 }
 0xf7e   :  { %1000 = vpow2.f32 %v807_v28 }
 0xf7f   :  { %1002 = vpow2.f32 %v813_v33 }
 0xf83   :  { %v999_v34 = vpop.eup %998 }
 0xf84   :  { %v1001_v35 = vpop.eup %1000  ;;  %v838_v36 = vmul.f32 0.6931472, %v999_v34 }
 0xf85   :  { %823 = vadd.xlane.f32.xlu2 %v1001_v35  ;;  %v1003_v38 = vpop.eup %1002 }
 0xf86   :  { %v853_v37 = vsub.f32 %v797_v8, %v838_v36 }
 0xf88   :  { %861 = vst [vmem:[#allocation4] sm:$0xff] %v853_v37 }
 0xf8d   :  { %829 = vadd.xlane.f32.xlu2 %v1003_v38 }
 0xf9e   :  { %v681_v39 = vpop.permute.xlu2 %680 }
 0xf9f   :  { %684 = vst.msk [vmem:[#allocation3 + $0x38] sm:$0xff] %vm114_vm5, %v681_v39 }
 0xfa6   :  { %v692_v40 = vld [vmem:[#allocation3 + $0x38] sm:$0xff] }
 0xfa7   :  { %917 = vmatmul.msk.f32.gmra.mxu3 %vm114_vm5, %v692_v40 }
 0xfe0   :  { %v786_v41 = vpop.xlane.xlu2 %785 }
 0xfe1   :  { %v799_v57 = vsub.f32 %v775_v20, %v786_v41 }
 0xfe3   :  { %v809_v59 = vmul.f32 1.442695, %v799_v57 }
 0xfe8   :  { %v788_v42 = vpop.xlane.xlu2 %787 }
 0xfe9   :  { %v800_v43 = vsub.f32 %v776_v24, %v788_v42 }
 0xfeb   :  { %v811_v44 = vmul.f32 1.442695, %v800_v43 }
 0xfed   :  { %1004 = vpow2.f32 %v811_v44 }
 0xff0   :  { %v794_v45 = vpop.xlane.xlu2 %793 }
 0xff1   :  { %v803_v46 = vsub.f32 %v779_v31, %v794_v45 }
 0xff3   :  { %v1005_v47 = vpop.eup %1004  ;;  %v817_v48 = vmul.f32 1.442695, %v803_v46 }
 0xff4   :  { %827 = vadd.xlane.f32.xlu1 %v1005_v47 }
 0xff5   :  { %1006 = vpow2.f32 %v817_v48 }
 0xff8   :  { %v824_v49 = vpop.xlane.xlu2 %823 }
 0xff9   :  { %1008 = vlog2.f32 %v824_v49 }
 0xffb   :  { %v1007_v50 = vpop.eup %1006 }
 0xffc   :  { %833 = vadd.xlane.f32.xlu1 %v1007_v50 }
 0xfff   :  { %v1009_v9 = vpop.eup %1008 }
0x1000   :  { %v840_v11 = vmul.f32 0.6931472, %v1009_v9  ;;  %v830_v51 = vpop.xlane.xlu2 %829 }
0x1001   :  { %1010 = vlog2.f32 %v830_v51 }
0x1002   :  { %v854_v52 = vsub.f32 %v798_v26, %v840_v11  ;;  %1012 = vpow2.f32 %v809_v59 }
0x1003   :  { %1014 = vpow2.f32 %v815_v63 }
0x1004   :  { %862 = vst [vmem:[#allocation4 + $0x8] sm:$0xff] %v854_v52 }
0x1007   :  { %v1011_v53 = vpop.eup %1010 }
0x1008   :  { %v846_v54 = vmul.f32 0.6931472, %v1011_v53  ;;  %v1013_v0 = vpop.eup %1012 }
0x1009   :  { %v1015_v1 = vpop.eup %1014 }
0x100a   :  { %v857_v55 = vsub.f32 %v801_v32, %v846_v54 }
0x100c   :  { %865 = vst [vmem:[#allocation4 + $0x20] sm:$0xff] %v857_v55 }
0x102a   :  { %v759_v58 = vpop.f32.mrf.mxu3 }
0x102b   :  { %v769_v60 = vmul.f32 0.999995, %v759_v58 }
0x102d   :  { %v780_v61 = vsel %vm772_vm4, %v769_v60, -1e+30 }
0x102e   :  { %795 = vmax.xlane.f32.xlu0 %v780_v61 }
0x1036   :  { %825 = vadd.xlane.f32.xlu0 %v1013_v0 }
0x103e   :  { %831 = vadd.xlane.f32.xlu0 %v1015_v1 }
0x1067   :  { %v828_v2 = vpop.xlane.xlu1 %827 }
0x1068   :  { %1016 = vlog2.f32 %v828_v2 }
0x106e   :  { %v1017_v3 = vpop.eup %1016 }
0x106f   :  { %v844_v4 = vmul.f32 0.6931472, %v1017_v3  ;;  %v834_v5 = vpop.xlane.xlu1 %833 }
0x1070   :  { %1018 = vlog2.f32 %v834_v5 }
0x1071   :  { %v856_v6 = vsub.f32 %v800_v43, %v844_v4 }
0x1073   :  { %864 = vst [vmem:[#allocation4 + $0x18] sm:$0xff] %v856_v6 }
0x1076   :  { %v1019_v56 = vpop.eup %1018 }
0x1077   :  { %v850_v7 = vmul.f32 0.6931472, %v1019_v56 }
0x1079   :  { %v859_v8 = vsub.f32 %v803_v46, %v850_v7 }
0x107b   :  { %867 = vst [vmem:[#allocation4 + $0x30] sm:$0xff] %v859_v8 }
0x10a1   :  { %v796_v10 = vpop.xlane.xlu0 %795 }
0x10a2   :  { %v804_v12 = vsub.f32 %v780_v61, %v796_v10 }
0x10a4   :  { %v819_v13 = vmul.f32 1.442695, %v804_v12 }
0x10a6   :  { %1020 = vpow2.f32 %v819_v13 }
0x10a9   :  { %v826_v14 = vpop.xlane.xlu0 %825 }
0x10aa   :  { %1022 = vlog2.f32 %v826_v14 }
0x10ac   :  { %v1021_v15 = vpop.eup %1020 }
0x10ad   :  { %835 = vadd.xlane.f32.xlu2 %v1021_v15 }
0x10b0   :  { %v1023_v16 = vpop.eup %1022 }
0x10b1   :  { %v842_v17 = vmul.f32 0.6931472, %v1023_v16  ;;  %v832_v18 = vpop.xlane.xlu0 %831 }
0x10b2   :  { %1024 = vlog2.f32 %v832_v18 }
0x10b3   :  { %v855_v19 = vsub.f32 %v799_v57, %v842_v17 }
0x10b5   :  { %863 = vst [vmem:[#allocation4 + $0x10] sm:$0xff] %v855_v19 }
0x10b8   :  { %v1025_v20 = vpop.eup %1024 }
0x10b9   :  { %v848_v21 = vmul.f32 0.6931472, %v1025_v20 }
0x10bb   :  { %v858_v22 = vsub.f32 %v802_v62, %v848_v21 }
0x10bd   :  { %866 = vst [vmem:[#allocation4 + $0x28] sm:$0xff] %v858_v22 }
0x1120   :  { %v836_v23 = vpop.xlane.xlu2 %835 }
0x1121   :  { %1026 = vlog2.f32 %v836_v23 }
0x1127   :  { %v1027_v24 = vpop.eup %1026 }
0x1128   :  { %v852_v25 = vmul.f32 0.6931472, %v1027_v24 }
0x112a   :  { %v860_v26 = vsub.f32 %v804_v12, %v852_v25 }
0x112c   :  { %868 = vst [vmem:[#allocation4 + $0x38] sm:$0xff] %v860_v26 }
0x112d   :  { %881 = dma.vmem_to_hbm [thread:$0]  %s874_s29, 1024, %s876_s7, [#allocation5], %s1059_s3, %s1059_s3, %s1060_s8  }
0x112e   :  { %1052 = dma.done.wait [#allocation5], 1024  }
0x112f   :  { %1053 = vsyncadd [#allocation5], 4294966272 }
0x1130   :  { %886 = vsyncpa [#allocation5], 1 }

</bundles_post_ra>
